<compile_context>
chip_gen: v5e
topology: v5e:2x2
jax: 0.10.0
libtpu: 0.0.40
codegen_flags: <defaults>
</compile_context>

<pallas_src>
import functools

import jax
import jax.numpy as jnp
from jax.experimental import pallas as pl
from jax.experimental.pallas import tpu as pltpu

_OUT_DIM = 32  # true output width of fc3


def _round_up(n, m):
    return ((n + m - 1) // m) * m


def _mlp_kernel(x_ref, w1_ref, b1_ref, w2_ref, b2_ref, w3_ref, b3_ref, o_ref):
    """One batch tile: three MXU matmuls (bf16 in, f32 acc) + VPU bias/ReLU."""
    x = x_ref[...].astype(jnp.bfloat16)  # (TB, K) f32 load, free VPU cast

    h1 = jnp.dot(x, w1_ref[...], preferred_element_type=jnp.float32) + b1_ref[...]
    h1 = jnp.maximum(h1, 0.0)

    h2 = jnp.dot(h1.astype(jnp.bfloat16), w2_ref[...],
                 preferred_element_type=jnp.float32) + b2_ref[...]
    h2 = jnp.maximum(h2, 0.0)

    h3 = jnp.dot(h2.astype(jnp.bfloat16), w3_ref[...],
                 preferred_element_type=jnp.float32) + b3_ref[...]
    h3 = jnp.maximum(h3, 0.0)  # final ReLU IS in the PyTorch forward

    # Dropout(p=0.2): identity in eval mode.
    # TODO(synk): add pltpu.prng_random_bits-based dropout mask if
    # training-mode semantics are ever required.
    o_ref[...] = h3.astype(o_ref.dtype)


def init_params(key, input_dim):
    """Natural nn.Linear-shaped params, stored transposed as (in, out), f32."""
    ks = jax.random.split(key, 6)

    def uniform_like_torch(k, fan_in, shape):
        bound = 1.0 / jnp.sqrt(jnp.float32(fan_in))
        return jax.random.uniform(k, shape, jnp.float32, -bound, bound)

    w1 = uniform_like_torch(ks[0], input_dim, (input_dim, 128))
    b1 = uniform_like_torch(ks[1], input_dim, (1, 128))
    w2 = uniform_like_torch(ks[2], 128, (128, 64))
    b2 = uniform_like_torch(ks[3], 128, (1, 64))
    w3 = uniform_like_torch(ks[4], 64, (64, 32))
    b3 = uniform_like_torch(ks[5], 64, (1, 32))
    return (w1, b1, w2, b2, w3, b3)


def pack_params(params):
    """Weights -> bf16 (MXU-native), biases -> f32.  No padding needed."""
    w1, b1, w2, b2, w3, b3 = params
    return (w1.astype(jnp.bfloat16), b1.astype(jnp.float32),
            w2.astype(jnp.bfloat16), b2.astype(jnp.float32),
            w3.astype(jnp.bfloat16), b3.astype(jnp.float32))


def _pick_tb(B, tb_max):
    """Batch-tile size.

    Small B: one exact-fit block (multiple of the 8-row f32 sublane granule).
    Large B: ~half the batch rounded to 256 so the grid has >= 2 steps (both
    v7x TensorCores busy) while amortizing per-step overhead; capped at tb_max.
    """
    if B <= 256:
        return _round_up(max(B, 1), 8)
    return max(256, min(tb_max, _round_up(pl.cdiv(B, 2), 256)))


@functools.partial(jax.jit, static_argnames=("tb_max",))
def non_text_nn_forward(x, packed_params, *, tb_max=2048):
    """x: (B, input_dim) f32. Returns (B, 32) f32."""
    w1, b1, w2, b2, w3, b3 = packed_params
    B, K = x.shape

    tb = _pick_tb(B, tb_max)
    grid = (pl.cdiv(B, tb),)

    # Weights/biases: full-array blocks, constant index_map -> VMEM-resident.
    resident = lambda p: pl.BlockSpec(p.shape, lambda i: (0, 0))

    flops = 2 * B * (K * 128 + 128 * 64 + 64 * 32)
    bytes_accessed = (x.size * x.dtype.itemsize + B * _OUT_DIM * 4
                      + sum(int(p.size) * p.dtype.itemsize
                            for p in (w1, b1, w2, b2, w3, b3)))

    out = pl.pallas_call(
        _mlp_kernel,
        out_shape=jax.ShapeDtypeStruct((B, _OUT_DIM), jnp.float32),
        grid=grid,
        in_specs=[
            pl.BlockSpec((tb, K), lambda i: (i, 0)),   # x: tiled over batch,
            resident(w1), resident(b1),                # full (unpadded) K lanes
            resident(w2), resident(b2),
            resident(w3), resident(b3),
        ],
        out_specs=pl.BlockSpec((tb, _OUT_DIM), lambda i: (i, 0)),  # true 32-wide
        compiler_params=pltpu.CompilerParams(
            dimension_semantics=("parallel",),          # 2 TCs on v7x
            vmem_limit_bytes=48 * 1024 * 1024),         # > v5e's 16 MiB default
        cost_estimate=pl.CostEstimate(
            flops=flops, transcendentals=0, bytes_accessed=bytes_accessed),
    )(x, w1, b1, w2, b2, w3, b3)

    return out  # already (B, 32); no wrapper-side slice pass


def reference_forward(x, params):
    """Pure-JAX f32 reference of the PyTorch forward (dropout eval = identity)."""
    w1, b1, w2, b2, w3, b3 = params
    h = jnp.maximum(x @ w1 + b1, 0.0)
    h = jnp.maximum(h @ w2 + b2, 0.0)
    h = jnp.maximum(h @ w3 + b3, 0.0)
    return h


if __name__ == "__main__":
    key = jax.random.PRNGKey(0)
    k_x, k_p = jax.random.split(key)

    batch, input_dim = 8, 32
    x = jax.random.normal(k_x, (batch, input_dim), jnp.float32)
    params = init_params(k_p, input_dim)
    packed = pack_params(params)

    out = non_text_nn_forward(x, packed)
    out = jax.block_until_ready(out)

    ref = reference_forward(x, params)
    assert out.shape == (batch, _OUT_DIM)
    # bf16 MXU inputs with f32 accumulation -> loosened tolerance vs f32 ref.
    assert jnp.allclose(out, ref, atol=5e-2, rtol=5e-2), "mismatch vs reference"

    print("KERNEL_OK")
</pallas_src>

<mosaic_0001>
module attributes {stable_mosaic.version = 11 : i64} {
  func.func @_mlp_kernel(%arg0: i32, %arg1: memref<8x32xf32, #tpu.memory_space<vmem>>, %arg2: memref<32x128xbf16, #tpu.memory_space<vmem>>, %arg3: memref<1x128xf32, #tpu.memory_space<vmem>>, %arg4: memref<128x64xbf16, #tpu.memory_space<vmem>>, %arg5: memref<1x64xf32, #tpu.memory_space<vmem>>, %arg6: memref<64x32xbf16, #tpu.memory_space<vmem>>, %arg7: memref<1x32xf32, #tpu.memory_space<vmem>>, %arg8: memref<8x32xf32, #tpu.memory_space<vmem>>) attributes {dimension_semantics = [#tpu.dimension_semantics<parallel>], iteration_bounds = array<i64: 1>, scalar_prefetch = 0 : i64, scratch_operands = 0 : i64, tpu.core_type = #tpu.core_type<tc>, window_params = [{transform_indices = @transform_0, window_bounds = array<i64: 8, 32>}, {pipeline_mode = #tpu.pipeline_mode<synchronous>, transform_indices = @transform_1, window_bounds = array<i64: 32, 128>}, {pipeline_mode = #tpu.pipeline_mode<synchronous>, transform_indices = @transform_2, window_bounds = array<i64: 1, 128>}, {pipeline_mode = #tpu.pipeline_mode<synchronous>, transform_indices = @transform_3, window_bounds = array<i64: 128, 64>}, {pipeline_mode = #tpu.pipeline_mode<synchronous>, transform_indices = @transform_4, window_bounds = array<i64: 1, 64>}, {pipeline_mode = #tpu.pipeline_mode<synchronous>, transform_indices = @transform_5, window_bounds = array<i64: 64, 32>}, {pipeline_mode = #tpu.pipeline_mode<synchronous>, transform_indices = @transform_6, window_bounds = array<i64: 1, 32>}, {transform_indices = @transform_7, window_bounds = array<i64: 8, 32>}]} {
    %c0 = arith.constant 0 : index
    %c0_0 = arith.constant 0 : index
    %0 = vector.load %arg1[%c0, %c0_0] : memref<8x32xf32, #tpu.memory_space<vmem>>, vector<8x32xf32>
    %1 = arith.truncf %0 : vector<8x32xf32> to vector<8x32xbf16>
    %c0_1 = arith.constant 0 : index
    %c0_2 = arith.constant 0 : index
    %2 = vector.load %arg2[%c0_1, %c0_2] : memref<32x128xbf16, #tpu.memory_space<vmem>>, vector<32x128xbf16>
    %cst = arith.constant dense<0.000000e+00> : vector<8x128xf32>
    %3 = tpu.matmul %1, %2, %cst {dimension_numbers = #tpu.dot_dimension_numbers<[1], [0], [0], [1], [0, 0, 1, 1], [], []>} : vector<8x32xbf16>, vector<32x128xbf16>, vector<8x128xf32> -> vector<8x128xf32>
    %c0_3 = arith.constant 0 : index
    %c0_4 = arith.constant 0 : index
    %4 = vector.load %arg3[%c0_3, %c0_4] : memref<1x128xf32, #tpu.memory_space<vmem>>, vector<1x128xf32>
    %5 = vector.broadcast %4 : vector<1x128xf32> to vector<8x128xf32>
    %6 = arith.addf %3, %5 : vector<8x128xf32>
    %cst_5 = arith.constant 0.000000e+00 : f32
    %7 = vector.broadcast %cst_5 : f32 to vector<8x128xf32>
    %8 = arith.maximumf %6, %7 : vector<8x128xf32>
    %9 = arith.truncf %8 : vector<8x128xf32> to vector<8x128xbf16>
    %c0_6 = arith.constant 0 : index
    %c0_7 = arith.constant 0 : index
    %10 = vector.load %arg4[%c0_6, %c0_7] : memref<128x64xbf16, #tpu.memory_space<vmem>>, vector<128x64xbf16>
    %cst_8 = arith.constant dense<0.000000e+00> : vector<8x64xf32>
    %11 = tpu.matmul %9, %10, %cst_8 {dimension_numbers = #tpu.dot_dimension_numbers<[1], [0], [0], [1], [0, 0, 1, 1], [], []>} : vector<8x128xbf16>, vector<128x64xbf16>, vector<8x64xf32> -> vector<8x64xf32>
    %c0_9 = arith.constant 0 : index
    %c0_10 = arith.constant 0 : index
    %12 = vector.load %arg5[%c0_9, %c0_10] : memref<1x64xf32, #tpu.memory_space<vmem>>, vector<1x64xf32>
    %13 = vector.broadcast %12 : vector<1x64xf32> to vector<8x64xf32>
    %14 = arith.addf %11, %13 : vector<8x64xf32>
    %cst_11 = arith.constant 0.000000e+00 : f32
    %15 = vector.broadcast %cst_11 : f32 to vector<8x64xf32>
    %16 = arith.maximumf %14, %15 : vector<8x64xf32>
    %17 = arith.truncf %16 : vector<8x64xf32> to vector<8x64xbf16>
    %c0_12 = arith.constant 0 : index
    %c0_13 = arith.constant 0 : index
    %18 = vector.load %arg6[%c0_12, %c0_13] : memref<64x32xbf16, #tpu.memory_space<vmem>>, vector<64x32xbf16>
    %cst_14 = arith.constant dense<0.000000e+00> : vector<8x32xf32>
    %19 = tpu.matmul %17, %18, %cst_14 {dimension_numbers = #tpu.dot_dimension_numbers<[1], [0], [0], [1], [0, 0, 1, 1], [], []>} : vector<8x64xbf16>, vector<64x32xbf16>, vector<8x32xf32> -> vector<8x32xf32>
    %c0_15 = arith.constant 0 : index
    %c0_16 = arith.constant 0 : index
    %20 = vector.load %arg7[%c0_15, %c0_16] : memref<1x32xf32, #tpu.memory_space<vmem>>, vector<1x32xf32>
    %21 = vector.broadcast %20 : vector<1x32xf32> to vector<8x32xf32>
    %22 = arith.addf %19, %21 : vector<8x32xf32>
    %cst_17 = arith.constant 0.000000e+00 : f32
    %23 = vector.broadcast %cst_17 : f32 to vector<8x32xf32>
    %24 = arith.maximumf %22, %23 : vector<8x32xf32>
    %c0_18 = arith.constant 0 : index
    %c0_19 = arith.constant 0 : index
    %25 = vector.load %arg8[%c0_18, %c0_19] : memref<8x32xf32, #tpu.memory_space<vmem>>, vector<8x32xf32>
    tpu.vector_store %arg8[%c0_18, %c0_19], %24 {strides = array<i32>} : memref<8x32xf32, #tpu.memory_space<vmem>>, vector<8x32xf32>,
    return
  }
  func.func @transform_0(%arg0: i32) -> (i32, i32) {
    %c0_i32 = arith.constant 0 : i32
    %c0_i32_0 = arith.constant 0 : i32
    return %arg0, %c0_i32 : i32, i32
  }
  func.func @transform_1(%arg0: i32) -> (i32, i32) {
    %c0_i32 = arith.constant 0 : i32
    %c0_i32_0 = arith.constant 0 : i32
    %c0_i32_1 = arith.constant 0 : i32
    return %c0_i32, %c0_i32_0 : i32, i32
  }
  func.func @transform_2(%arg0: i32) -> (i32, i32) {
    %c0_i32 = arith.constant 0 : i32
    %c0_i32_0 = arith.constant 0 : i32
    %c0_i32_1 = arith.constant 0 : i32
    return %c0_i32, %c0_i32_0 : i32, i32
  }
  func.func @transform_3(%arg0: i32) -> (i32, i32) {
    %c0_i32 = arith.constant 0 : i32
    %c0_i32_0 = arith.constant 0 : i32
    %c0_i32_1 = arith.constant 0 : i32
    return %c0_i32, %c0_i32_0 : i32, i32
  }
  func.func @transform_4(%arg0: i32) -> (i32, i32) {
    %c0_i32 = arith.constant 0 : i32
    %c0_i32_0 = arith.constant 0 : i32
    %c0_i32_1 = arith.constant 0 : i32
    return %c0_i32, %c0_i32_0 : i32, i32
  }
  func.func @transform_5(%arg0: i32) -> (i32, i32) {
    %c0_i32 = arith.constant 0 : i32
    %c0_i32_0 = arith.constant 0 : i32
    %c0_i32_1 = arith.constant 0 : i32
    return %c0_i32, %c0_i32_0 : i32, i32
  }
  func.func @transform_6(%arg0: i32) -> (i32, i32) {
    %c0_i32 = arith.constant 0 : i32
    %c0_i32_0 = arith.constant 0 : i32
    %c0_i32_1 = arith.constant 0 : i32
    return %c0_i32, %c0_i32_0 : i32, i32
  }
  func.func @transform_7(%arg0: i32) -> (i32, i32) {
    %c0_i32 = arith.constant 0 : i32
    %c0_i32_0 = arith.constant 0 : i32
    return %arg0, %c0_i32 : i32, i32
  }
}

</mosaic_0001>

<bundles_post_ra>
// kernel: non_text_nn_forward.1
= control target key start
LH: loop header
LB: loop body
LE: loop exit
PB: predicated region body
PF: predicated region fallthrough
CT: control target
= control target key end

     0   :  { %s425_s0 = inlined_call_operand.vmem [shape: f32[8,32], index: 0, kind: input, shape index: {}]   ;;  %s426_s1 = inlined_call_operand.vmem [shape: bf16[32,128], index: 1, kind: input, shape index: {}]   ;;  %s427_s2 = inlined_call_operand.vmem [shape: f32[1,128], index: 2, kind: input, shape index: {}]   ;;  %s428_s3 = inlined_call_operand.vmem [shape: bf16[128,64], index: 3, kind: input, shape index: {}]   ;;  %s429_s4 = inlined_call_operand.vmem [shape: f32[1,64], index: 4, kind: input, shape index: {}]   ;;  %s430_s5 = inlined_call_operand.vmem [shape: bf16[64,32], index: 5, kind: input, shape index: {}]   ;;  %s431_s6 = inlined_call_operand.vmem [shape: f32[1,32], index: 6, kind: input, shape index: {}]   ;;  %s432_s7 = inlined_call_operand.hbm [shape: f32[8,32], index: 7, kind: output, shape index: {}]  }
   0x1   :  { %v282_v0 = vld [vmem:[%s426_s1 + $0x8] sm:$0xff]  ;;  %v290_v1 = vld [vmem:[%s428_s3 + $0x38] sm:$0xff]  ;;  %v281_v2 = vld [vmem:[%s426_s1] sm:$0xff] }
   0x2   :  { %60 = vmatpush.bf16.msra.mxu0 %v282_v0  ;;  %v28_v3 = vld [vmem:[%s425_s0] sm:$0xff]  ;;  %137 = vmatpush.bf16.msra.mxu1 %v290_v1  ;;  %v289_v4 = vld [vmem:[%s428_s3 + $0x30] sm:$0xff] }
   0x3   :  { %12 = vsyncpa [#allocation3], 0  ;;  %v29_v5 = vpack.c.bf16 %v28_v3, %v28_v3  ;;  %vm50_vm0 = vcmask 261120   ;;  %v288_v6 = vld [vmem:[%s428_s3 + $0x28] sm:$0xff]  ;;  %v287_v7 = vld [vmem:[%s428_s3 + $0x20] sm:$0xff]  ;;  %vm188_vm1 = vcmask 523264  }
   0x4   :  { %v286_v8 = vld [vmem:[%s428_s3 + $0x18] sm:$0xff]  ;;  %v285_v9 = vld [vmem:[%s428_s3 + $0x10] sm:$0xff]  ;;  %v284_v10 = vld [vmem:[%s428_s3 + $0x8] sm:$0xff]  ;;  %s325_s10 = smov [#allocation2]   ;;  %s214_s1 = sshll.u32 %s432_s7, 4  ;;  %s215_s1 = int_to_ptr.hbm [resolvable:$true] %s214_s1 }
   0x5   :  { %v283_v11 = vld [vmem:[%s428_s3] sm:$0xff]  ;;  %v294_v12 = vld [vmem:[%s430_s5 + $0x18] sm:$0xff]  ;;  %v293_v13 = vld [vmem:[%s430_s5 + $0x10] sm:$0xff]  ;;  %s212_s11 = sshll.u32 %s325_s10, 4  ;;  %s213_s11 = int_to_ptr.vmem [resolvable:$true] %s212_s11 }
   0x6   :  { %61 = vmatpush.bf16.msra.mxu0 %v281_v2  ;;  %138 = vmatpush.bf16.msra.mxu1 %v289_v4  ;;  %v296_v14 = vld [vmem:[%s427_s2] ss:$0 sm:$0xff]  ;;  %v292_v20 = vld [vmem:[%s430_s5 + $0x8] sm:$0xff] }
   0x7   :  { %196 = vmatpush.bf16.msra.mxu2 %v294_v12  ;;  %v291_v21 = vld [vmem:[%s430_s5] sm:$0xff] }
   0x8   :  { %v297_v22 = vld [vmem:[%s429_s4] ss:$0 sm:$0xff] }
   0x9   :  { %231 = vmatmul.msk.bf16.vlgmr.msra.gmra.mxu0 %vm50_vm0, %v29_v5  ;;  %v298_v28 = vld [vmem:[%s431_s6] ss:$0 sm:$0xff] }
   0xa   :  { %139 = vmatpush.bf16.msra.mxu1 %v288_v6 }
   0xb   :  { %197 = vmatpush.bf16.msra.mxu2 %v293_v13 }
   0xe   :  { %140 = vmatpush.bf16.msra.mxu1 %v287_v7 }
   0xf   :  { %198 = vmatpush.bf16.msra.mxu2 %v292_v20 }
  0x12   :  { %141 = vmatpush.bf16.msra.mxu1 %v286_v8 }
  0x13   :  { %199 = vmatpush.bf16.msra.mxu2 %v291_v21 }
  0x16   :  { %142 = vmatpush.bf16.msra.mxu1 %v285_v9 }
  0x1a   :  { %143 = vmatpush.bf16.msra.mxu1 %v284_v10 }
  0x1e   :  { %144 = vmatpush.bf16.msra.mxu1 %v283_v11 }
  0x86   :  { %v63_v15 = vpop.f32.mrf.mxu0 }
  0x87   :  { %v64_v16 = vadd.f32 %v296_v14, %v63_v15 }
  0x89   :  { %v67_v17 = vmax.f32 %v64_v16, 0.0 }
  0x8b   :  { %v68_v18 = vpack.c.bf16 %v67_v17, %v67_v17 }
  0x8d   :  { %145 = vmatmul.bf16.vlgmr.msra.gmra.mxu1 %v68_v18 }
  0x8e   :  { %v65_v19 = vpop.f32.mrf.mxu0 }
 0x10a   :  { %v146_v23 = vpop.f32.mrf.mxu1 }
 0x10b   :  { %v147_v24 = vadd.f32 %v297_v22, %v146_v23 }
 0x10d   :  { %v150_v25 = vmax.f32 %v147_v24, 0.0 }
 0x10f   :  { %v151_v26 = vpack.c.bf16 %v150_v25, %v150_v25 }
 0x111   :  { %280 = vmatmul.msk.bf16.vlgmr.msra.gmra.mxu2 %vm188_vm1, %v151_v26 }
 0x112   :  { %v148_v27 = vpop.f32.mrf.mxu1 }
 0x194   :  { %v201_v29 = vpop.f32.mrf.mxu2 }
 0x195   :  { %v202_v30 = vadd.f32 %v298_v28, %v201_v29 }
 0x197   :  { %v205_v31 = vmax.f32 %v202_v30, 0.0 }
 0x199   :  { %206 = vst.msk [vmem:[#allocation2] sm:$0xff] %vm50_vm0, %v205_v31 }
 0x19a   :  { %217 = dma.vmem_to_hbm [thread:$0]  %s213_s11, 128, %s215_s1, [#allocation3]  }
 0x19c   :  { %v203_v32 = vpop.f32.mrf.mxu2 }
 0x19d   :  { %323 = dma.done.wait [#allocation3], 128  }
 0x19e   :  { %324 = vsyncadd [#allocation3], 4294967168 }
 0x19f   :  { %222 = vsyncpa [#allocation3], 1 }

</bundles_post_ra>
